<compile_context>
chip_gen: v7x
topology: tpu7x:2x2x1
jax: 0.10.0
libtpu: 0.0.40
codegen_flags: <defaults>
</compile_context>

<pallas_src>
import jax
import jax.numpy as jnp
from jax.experimental import pallas as pl
from jax.experimental.pallas import tpu as pltpu


def quadratic_kernel(data_ref, x_ref, out_ref):
    # data_ref: SMEM (3,) f32 = (a, b, c); x_ref: SMEM (1,) f32; out_ref: SMEM (1,) f32.
    a = data_ref[0]
    b = data_ref[1]
    c = data_ref[2]
    x = x_ref[0]
    # Horner form: 2 mul + 2 add on the scalar ALU.
    out_ref[0] = (a * x + b) * x + c


def _quadratic_pallas(data_f32, x_f32):
    out = pl.pallas_call(
        quadratic_kernel,
        out_shape=jax.ShapeDtypeStruct((1,), jnp.float32),
        in_specs=[
            pl.BlockSpec(memory_space=pltpu.SMEM),
            pl.BlockSpec(memory_space=pltpu.SMEM),
        ],
        out_specs=pl.BlockSpec(memory_space=pltpu.SMEM),
        # 4 flops (2 mul + 2 add), 4 scalar loads + 1 scalar store ~= 20 bytes.
        cost_estimate=pl.CostEstimate(
            flops=4, transcendentals=0, bytes_accessed=20),
    )(data_f32, x_f32)
    return out[0]


@jax.custom_vjp
def quadratic_func(data, x_param):
    """Evaluates data[0]*x^2 + data[1]*x + data[2] via a Pallas TPU kernel.

    data: array-like of 3 coefficients; x_param: scalar (shape () or (1,)).
    """
    data_f = jnp.asarray(data, dtype=jnp.float32).reshape(3)
    x_f = jnp.asarray(x_param, dtype=jnp.float32).reshape(1)
    return _quadratic_pallas(data_f, x_f)


def _quadratic_fwd(data, x_param):
    out = quadratic_func(data, x_param)
    # Save the ORIGINAL primals so bwd can return cotangents with matching
    # shapes/dtypes (shape-robustness fix from the review).
    return out, (data, x_param)


def _quadratic_bwd(res, g):
    data, x_param = res
    data_arr = jnp.asarray(data)
    x_arr = jnp.asarray(x_param)
    data_f = data_arr.astype(jnp.float32).reshape(3)
    x = x_arr.astype(jnp.float32).reshape(())
    # d/d_data = [x^2, x, 1];  d/dx = 2*a*x + b
    d_data = (g * jnp.stack([x * x, x, jnp.ones_like(x)]))
    d_x = g * (2.0 * data_f[0] * x + data_f[1])
    # Match primal shapes/dtypes exactly.
    d_data = d_data.reshape(data_arr.shape).astype(data_arr.dtype)
    d_x = d_x.reshape(x_arr.shape).astype(x_arr.dtype)
    return d_data, d_x


quadratic_func.defvjp(_quadratic_fwd, _quadratic_bwd)

# jit the whole wrapper so casts + custom call + slice are one executable.
quadratic_func_jit = jax.jit(quadratic_func)


# Fused training step: forward (Pallas kernel) + analytic backward + SGD update
# compiled into ONE executable, amortizing the custom-call launch cost over the
# whole step (highest-value change from the performance review).
@jax.jit
def train_step(data, x_param, lr):
    loss, g_x = jax.value_and_grad(quadratic_func, argnums=1)(data, x_param)
    x_new = x_param - lr * g_x
    return loss, x_new


if __name__ == "__main__":
    # Parameter init from the module's __init__: x = 10.0 (deterministic).
    x_param = jnp.asarray(10.0, dtype=jnp.float32)

    # Deterministic example inputs. The module's default forward uses
    # data = [1, 1, 1]; also exercise random coefficients.
    key = jax.random.PRNGKey(0)
    rand_data = jax.random.uniform(
        key, (3,), dtype=jnp.float32, minval=-2.0, maxval=2.0)

    default_data = jnp.array([1.0, 1.0, 1.0], dtype=jnp.float32)

    # Case 1: default data = [1, 1, 1]  -> 1*100 + 1*10 + 1 = 111
    out_default = jax.block_until_ready(quadratic_func_jit(default_data, x_param))

    # Case 2: random coefficients.
    out_rand = jax.block_until_ready(quadratic_func_jit(rand_data, x_param))

    # Reference (plain JAX) check.
    def ref(data, x):
        return data[0] * x ** 2 + data[1] * x + data[2]

    assert jnp.allclose(out_default, ref(default_data, 10.0),
                        rtol=1e-6, atol=1e-6)
    assert jnp.allclose(out_rand, ref(rand_data, 10.0), rtol=1e-5, atol=1e-5)

    # Gradient check (custom_vjp path; forward still goes through the kernel).
    g_data, g_x = jax.grad(quadratic_func, argnums=(0, 1))(default_data, x_param)
    g_data = jax.block_until_ready(g_data)
    g_x = jax.block_until_ready(g_x)
    assert jnp.allclose(g_data, jnp.array([100.0, 10.0, 1.0]),
                        rtol=1e-5, atol=1e-5)
    assert jnp.allclose(g_x, 2.0 * 10.0 + 1.0, rtol=1e-5, atol=1e-5)
    assert g_x.shape == x_param.shape  # shape-robust cotangent

    # Shape-robustness check: x_param with shape (1,) must also round-trip.
    x_vec = jnp.asarray([10.0], dtype=jnp.float32)
    g_x_vec = jax.block_until_ready(
        jax.grad(quadratic_func, argnums=1)(default_data, x_vec))
    assert g_x_vec.shape == x_vec.shape

    # Fused fwd+bwd+update step (amortized dispatch): a few SGD steps on x.
    x_t = x_param
    lr = jnp.float32(0.01)
    for _ in range(3):
        loss, x_t = train_step(default_data, x_t, lr)
    loss = jax.block_until_ready(loss)
    x_t = jax.block_until_ready(x_t)
    # Reference SGD trajectory in plain JAX/float32.
    x_ref = 10.0
    for _ in range(3):
        loss_ref = 1.0 * x_ref ** 2 + 1.0 * x_ref + 1.0
        x_ref = x_ref - 0.01 * (2.0 * x_ref + 1.0)
    assert jnp.allclose(loss, loss_ref, rtol=1e-5, atol=1e-5)
    assert jnp.allclose(x_t, x_ref, rtol=1e-5, atol=1e-5)

    print("KERNEL_OK")
</pallas_src>

<mosaic_0001>
module attributes {stable_mosaic.version = 11 : i64} {
  func.func @quadratic_kernel(%arg0: memref<3xf32, #tpu.memory_space<smem>>, %arg1: memref<1xf32, #tpu.memory_space<smem>>, %arg2: memref<1xf32, #tpu.memory_space<smem>>) attributes {dimension_semantics = [], scalar_prefetch = 0 : i64, scratch_operands = 0 : i64, tpu.core_type = #tpu.core_type<tc>} {
    %c0 = arith.constant 0 : index
    %0 = memref.load %arg0[%c0] : memref<3xf32, #tpu.memory_space<smem>>
    %c1 = arith.constant 1 : index
    %1 = memref.load %arg0[%c1] : memref<3xf32, #tpu.memory_space<smem>>
    %c2 = arith.constant 2 : index
    %2 = memref.load %arg0[%c2] : memref<3xf32, #tpu.memory_space<smem>>
    %c0_0 = arith.constant 0 : index
    %3 = memref.load %arg1[%c0_0] : memref<1xf32, #tpu.memory_space<smem>>
    %4 = arith.mulf %0, %3 : f32
    %5 = arith.addf %4, %1 : f32
    %6 = arith.mulf %5, %3 : f32
    %7 = arith.addf %6, %2 : f32
    %c0_1 = arith.constant 0 : index
    %8 = memref.load %arg2[%c0_1] : memref<1xf32, #tpu.memory_space<smem>>
    memref.store %7, %arg2[%c0_1] : memref<1xf32, #tpu.memory_space<smem>>
    return
  }
}

</mosaic_0001>

<bundles_post_ra>
// kernel: quadratic_func.1
= control target key start
LH: loop header
LB: loop body
LE: loop exit
PB: predicated region body
PF: predicated region fallthrough
CT: control target
= control target key end

     0   :  { %8 = vsyncpa [#allocation5], 0  ;;  %s118_s0 = inlined_call_operand.vmem [shape: f32[3], index: 0, kind: input, shape index: {}]   ;;  %s119_s1 = inlined_call_operand.<no memory space> [shape: f32[1], index: 1, kind: input, shape index: {}]   ;;  %s120_s2 = inlined_call_operand.hbm [shape: f32[1], index: 2, kind: output, shape index: {}]  }
   0x1   :  { %9 = vsyncpa [#allocation4], 0  ;;  %s16_s11 = sshll.u32 %s118_s0, 4  ;;  %s17_s11 = int_to_ptr.vmem [resolvable:$true] %s16_s11 }
   0x2   :  { %s54_s12 = scalar_lea.vmem %s17_s11, 16  ;;  %p59_p1 = scmp.lt.s32.totalorder %s17_s11, %s17_s11 }
   0x3   :  { %p55_p0 = scmp.ne.s32.totalorder %s17_s11, %s54_s12  ;;  %p60_p2 = scmp.lt.s32.totalorder %s54_s12, %s54_s12 }
   0x5   :  { %p61_p3 = por %p60_p2, %p59_p1 }
   0x7   :  { %p62_p4 = pnand %p61_p3, %p55_p0 }
   0x9   :  { %65 = shalt.err (!%p62_p4)
}
   0xa   :  { %s80_s13 = smov [#allocation3]  }
   0xb   :  { %19 = dma.vmem_to_smem %s17_s11, 16, %s80_s13, [#allocation5]  }
   0xc   :  { %76 = dma.done.wait [#allocation5], 16  }
   0xd   :  { %77 = vsyncadd [#allocation5], 4294967280 }
   0xe   :  { %25 = sfence }
   0xf   :  { %s26_s14 = sld [smem:[#allocation3]]  ;;  %s50_s15 = sld [smem:[#allocation3 + $0x1]] }
  0x10   :  { %s51_s16 = sld [smem:[#allocation3 + $0x2]]  ;;  %s66_s26 = scalar_lea.hbm %s120_s2, 16 }
  0x11   :  { %p67_p5 = scmp.ne.s32.totalorder %s120_s2, %s66_s26  ;;  %p70_p6 = scmp.lt.u32.totalorder %s66_s26, %s120_s2 }
  0x13   :  { %p72_p7 = pnand %p70_p6, %p67_p5 }
  0x15   :  { %s30_s0 = smul.f32 %s26_s14, %s119_s1 }
  0x17   :  { %s31_s19 = sadd.f32 %s50_s15, %s30_s0 }
  0x19   :  { %s32_s22 = smul.f32 %s31_s19, %s119_s1 }
  0x1b   :  { %s33_s23 = sadd.f32 %s51_s16, %s32_s22 }
  0x1d   :  { %35 = sst [smem:[#allocation6]] %s33_s23 }
  0x1e   :  { %75 = shalt.err (!%p72_p7)
}
  0x1f   :  { %s81_s3 = smov [#allocation6]  }
  0x20   :  { %43 = dma.smem_to_hbm %s81_s3, 16, %s120_s2, [#allocation4]  }
  0x21   :  { %78 = dma.done.wait [#allocation4], 16  }
  0x22   :  { %79 = vsyncadd [#allocation4], 4294967280 }
  0x23   :  { %47 = sfence }
  0x24   :  { %48 = vsyncpa [#allocation4], 1 }
  0x25   :  { %49 = vsyncpa [#allocation5], 1 }

</bundles_post_ra>
